<compile_context>
chip_gen: v7x
topology: tpu7x:2x2x1
jax: 0.10.0
libtpu: 0.0.40
codegen_flags: <defaults>
</compile_context>

<pallas_src>
import math

import jax
import jax.numpy as jnp
from jax.experimental import pallas as pl
from jax.experimental.pallas import tpu as pltpu

HIDDEN = 64          # logical hidden width of the PyTorch module
HID_PAD = 128        # zero-padded hidden width (lane-dense intermediates)
_VMEM_TILE_BUDGET = 8 * 1024 * 1024   # per-step working-set budget (bytes)


def _round_up(x, m):
    return ((x + m - 1) // m) * m


# ----------------------------------------------------------------------------
# Kernel: fused 4-layer MLP on one batch tile.
# ----------------------------------------------------------------------------
def actor_mlp_kernel(x_ref,
                     w1_ref, w2_ref, w3_ref, w4_ref,
                     bh_ref, b4_ref,
                     out_ref):
    """x:(B,S) f32; w1:(S,128) w2/w3:(128,128) w4:(128,A) bf16;
    bh:(3,128) f32 (hidden biases); b4:(1,A) f32; out:(B,A) f32.

    MXU matmuls in bf16 with f32 accumulation; elementwise work in f32.
    Hidden padding columns carry exact zeros (weights and biases), so the
    result is identical to the unpadded 64-wide network.
    """
    x = x_ref[...].astype(jnp.bfloat16)
    bh = bh_ref[...]                       # load hidden biases once per tile

    h = jnp.dot(x, w1_ref[...], preferred_element_type=jnp.float32) + bh[0:1, :]
    h = jnp.maximum(h, 0.0)

    h = jnp.dot(h.astype(jnp.bfloat16), w2_ref[...],
                preferred_element_type=jnp.float32) + bh[1:2, :]
    h = jnp.maximum(h, 0.0)

    h = jnp.dot(h.astype(jnp.bfloat16), w3_ref[...],
                preferred_element_type=jnp.float32) + bh[2:3, :]
    h = jnp.maximum(h, 0.0)

    h = jnp.dot(h.astype(jnp.bfloat16), w4_ref[...],
                preferred_element_type=jnp.float32) + b4_ref[...]
    out_ref[...] = jnp.tanh(h).astype(out_ref.dtype)


# ----------------------------------------------------------------------------
# One-time parameter packing (hoisted out of the per-call path).
# ----------------------------------------------------------------------------
def prepare_params(params):
    """Pack (w,b) pairs into kernel-ready tensors.

    - weights stored [in, out] in bf16 for the MXU
    - hidden width zero-padded 64 -> HID_PAD (padded columns/rows are exact
      zeros, so outputs are bit-identical to the unpadded network)
    - the three hidden-layer biases are concatenated into one (3, HID_PAD)
      f32 array (one resident DMA instead of three tiny ones)
    """
    (w1, b1), (w2, b2), (w3, b3), (w4, b4) = params
    state_dim = w1.shape[0]
    action_dim = w4.shape[1]

    def pad_to(a, shape):
        out = jnp.zeros(shape, a.dtype)
        return out.at[: a.shape[0], : a.shape[1]].set(a)

    w1p = pad_to(w1, (state_dim, HID_PAD)).astype(jnp.bfloat16)
    w2p = pad_to(w2, (HID_PAD, HID_PAD)).astype(jnp.bfloat16)
    w3p = pad_to(w3, (HID_PAD, HID_PAD)).astype(jnp.bfloat16)
    w4p = pad_to(w4, (HID_PAD, action_dim)).astype(jnp.bfloat16)
    bh = jnp.concatenate(
        [pad_to(b1.astype(jnp.float32), (1, HID_PAD)),
         pad_to(b2.astype(jnp.float32), (1, HID_PAD)),
         pad_to(b3.astype(jnp.float32), (1, HID_PAD))], axis=0)
    b4p = b4.astype(jnp.float32).reshape(1, action_dim)
    return (w1p, w2p, w3p, w4p, bh, b4p)


# ----------------------------------------------------------------------------
# Forward pass wrapper.
# ----------------------------------------------------------------------------
def actor_model_forward(states, kparams):
    """Tiled, pipelined forward pass. Returns [batch, action_dim] float32."""
    w1, w2, w3, w4, bh, b4 = kparams
    batch, state_dim = states.shape
    action_dim = w4.shape[1]

    x = states.astype(jnp.float32)

    # --- batch tile: as large as the VMEM budget allows, but split so the
    #     grid has >=2 steps whenever possible (keeps both v7x TCs busy). ---
    per_row_bytes = (2 * state_dim + 2 * action_dim + 5 * HID_PAD) * 4
    max_tile = max(256, min(4096, (_VMEM_TILE_BUDGET // per_row_bytes) // 8 * 8))
    block_b = min(max_tile, _round_up(pl.cdiv(batch, 2), 8))
    grid = (pl.cdiv(batch, block_b),)   # ragged last block handled by Pallas

    weight_args = (w1, w2, w3, w4, bh, b4)

    # Weights/biases: constant index_map -> VMEM-resident across grid steps.
    resident = lambda a: pl.BlockSpec(a.shape, lambda i: (0, 0))

    in_specs = [pl.BlockSpec((block_b, state_dim), lambda i: (i, 0))]
    in_specs += [resident(a) for a in weight_args]
    # Narrow output block: last dim equals the full array dim, so only
    # batch*action_dim*4 bytes are ever written (no padded lanes, no slice).
    out_spec = pl.BlockSpec((block_b, action_dim), lambda i: (i, 0))

    # --- VMEM limit: ~2x the real per-step footprint (v7x-safe), not 48 MiB.
    wgt_bytes = sum(int(a.size) * a.dtype.itemsize for a in weight_args)
    tile_bytes = block_b * per_row_bytes
    vmem_limit = int(min(32 * 1024 * 1024,
                         max(4 * 1024 * 1024, 2 * (2 * wgt_bytes + tile_bytes))))

    # --- advisory cost estimate for XLA scheduling ---
    flops = 2 * batch * (state_dim * HID_PAD
                         + 2 * HID_PAD * HID_PAD
                         + HID_PAD * action_dim)
    cost = pl.CostEstimate(
        flops=flops,
        transcendentals=batch * action_dim,
        bytes_accessed=batch * (state_dim + action_dim) * 4 + wgt_bytes,
    )

    return pl.pallas_call(
        actor_mlp_kernel,
        out_shape=jax.ShapeDtypeStruct((batch, action_dim), jnp.float32),
        grid=grid,
        in_specs=in_specs,
        out_specs=out_spec,
        compiler_params=pltpu.CompilerParams(
            dimension_semantics=("parallel",),
            vmem_limit_bytes=vmem_limit,
        ),
        cost_estimate=cost,
    )(x, *weight_args)


# ----------------------------------------------------------------------------
# Parameter init (PyTorch nn.Linear default) and pure-JAX reference.
# ----------------------------------------------------------------------------
def init_linear(key, fan_in, fan_out):
    """PyTorch nn.Linear default init: U(-1/sqrt(fan_in), 1/sqrt(fan_in)).

    Weight stored as [in, out] (transposed from PyTorch's [out, in])."""
    bound = 1.0 / math.sqrt(fan_in)
    kw, kb = jax.random.split(key)
    w = jax.random.uniform(kw, (fan_in, fan_out), jnp.float32, -bound, bound)
    b = jax.random.uniform(kb, (1, fan_out), jnp.float32, -bound, bound)
    return w.astype(jnp.bfloat16), b


def make_params(key, state_dim, action_dim, hidden=HIDDEN):
    k1, k2, k3, k4 = jax.random.split(key, 4)
    return (
        init_linear(k1, state_dim, hidden),
        init_linear(k2, hidden, hidden),
        init_linear(k3, hidden, hidden),
        init_linear(k4, hidden, action_dim),
    )


def reference_forward(states, params):
    """Pure-JAX reference mirroring the kernel's bf16-matmul / f32-acc math."""
    (w1, b1), (w2, b2), (w3, b3), (w4, b4) = params

    def lin(x, w, b):
        return jnp.dot(x.astype(jnp.bfloat16), w.astype(jnp.bfloat16),
                       preferred_element_type=jnp.float32) + b

    h = jnp.maximum(lin(states, w1, b1), 0.0)
    h = jnp.maximum(lin(h, w2, b2), 0.0)
    h = jnp.maximum(lin(h, w3, b3), 0.0)
    return jnp.tanh(lin(h, w4, b4))


if __name__ == "__main__":
    key = jax.random.PRNGKey(0)
    k_params, k_s1, k_s2 = jax.random.split(key, 3)

    state_dim, action_dim = 32, 8
    params = make_params(k_params, state_dim, action_dim)
    kparams = prepare_params(params)          # one-time packing (hoisted)
    fwd = jax.jit(actor_model_forward)

    # Case 1: small, evenly-divisible batch.
    batch = 8
    states = jax.random.normal(k_s1, (batch, state_dim), jnp.float32)
    out = jax.block_until_ready(fwd(states, kparams))
    ref = reference_forward(states, params)
    assert out.shape == (batch, action_dim)
    assert jnp.allclose(out, ref, atol=2e-3, rtol=2e-3), "mismatch (even batch)"

    # Case 2: ragged batch (exercises Pallas partial-block handling; no
    # wrapper-side pad or slice passes).
    batch2 = 50
    states2 = jax.random.normal(k_s2, (batch2, state_dim), jnp.float32)
    out2 = jax.block_until_ready(fwd(states2, kparams))
    ref2 = reference_forward(states2, params)
    assert out2.shape == (batch2, action_dim)
    assert jnp.allclose(out2, ref2, atol=2e-3, rtol=2e-3), "mismatch (ragged batch)"

    print("KERNEL_OK")
</pallas_src>

<mosaic_0001>
module attributes {stable_mosaic.version = 11 : i64} {
  func.func @actor_mlp_kernel(%arg0: i32, %arg1: memref<8x32xf32, #tpu.memory_space<vmem>>, %arg2: memref<32x128xbf16, #tpu.memory_space<vmem>>, %arg3: memref<128x128xbf16, #tpu.memory_space<vmem>>, %arg4: memref<128x128xbf16, #tpu.memory_space<vmem>>, %arg5: memref<128x8xbf16, #tpu.memory_space<vmem>>, %arg6: memref<3x128xf32, #tpu.memory_space<vmem>>, %arg7: memref<1x8xf32, #tpu.memory_space<vmem>>, %arg8: memref<8x8xf32, #tpu.memory_space<vmem>>) attributes {dimension_semantics = [#tpu.dimension_semantics<parallel>], iteration_bounds = array<i64: 1>, scalar_prefetch = 0 : i64, scratch_operands = 0 : i64, tpu.core_type = #tpu.core_type<tc>, window_params = [{transform_indices = @transform_0, window_bounds = array<i64: 8, 32>}, {pipeline_mode = #tpu.pipeline_mode<synchronous>, transform_indices = @transform_1, window_bounds = array<i64: 32, 128>}, {pipeline_mode = #tpu.pipeline_mode<synchronous>, transform_indices = @transform_2, window_bounds = array<i64: 128, 128>}, {pipeline_mode = #tpu.pipeline_mode<synchronous>, transform_indices = @transform_3, window_bounds = array<i64: 128, 128>}, {pipeline_mode = #tpu.pipeline_mode<synchronous>, transform_indices = @transform_4, window_bounds = array<i64: 128, 8>}, {pipeline_mode = #tpu.pipeline_mode<synchronous>, transform_indices = @transform_5, window_bounds = array<i64: 3, 128>}, {pipeline_mode = #tpu.pipeline_mode<synchronous>, transform_indices = @transform_6, window_bounds = array<i64: 1, 8>}, {transform_indices = @transform_7, window_bounds = array<i64: 8, 8>}]} {
    %c0 = arith.constant 0 : index
    %c0_0 = arith.constant 0 : index
    %0 = vector.load %arg1[%c0, %c0_0] : memref<8x32xf32, #tpu.memory_space<vmem>>, vector<8x32xf32>
    %1 = arith.truncf %0 : vector<8x32xf32> to vector<8x32xbf16>
    %c0_1 = arith.constant 0 : index
    %c0_2 = arith.constant 0 : index
    %2 = vector.load %arg6[%c0_1, %c0_2] : memref<3x128xf32, #tpu.memory_space<vmem>>, vector<3x128xf32>
    %c0_3 = arith.constant 0 : index
    %c0_4 = arith.constant 0 : index
    %3 = vector.load %arg2[%c0_3, %c0_4] : memref<32x128xbf16, #tpu.memory_space<vmem>>, vector<32x128xbf16>
    %cst = arith.constant dense<0.000000e+00> : vector<8x128xf32>
    %4 = tpu.matmul %1, %3, %cst {dimension_numbers = #tpu.dot_dimension_numbers<[1], [0], [0], [1], [0, 0, 1, 1], [], []>} : vector<8x32xbf16>, vector<32x128xbf16>, vector<8x128xf32> -> vector<8x128xf32>
    %5 = vector.extract_strided_slice %2 {offsets = [0, 0], sizes = [1, 128], strides = [1, 1]} : vector<3x128xf32> to vector<1x128xf32>
    %6 = vector.broadcast %5 : vector<1x128xf32> to vector<8x128xf32>
    %7 = arith.addf %4, %6 : vector<8x128xf32>
    %cst_5 = arith.constant 0.000000e+00 : f32
    %8 = vector.broadcast %cst_5 : f32 to vector<8x128xf32>
    %9 = arith.maximumf %7, %8 : vector<8x128xf32>
    %10 = arith.truncf %9 : vector<8x128xf32> to vector<8x128xbf16>
    %c0_6 = arith.constant 0 : index
    %c0_7 = arith.constant 0 : index
    %11 = vector.load %arg3[%c0_6, %c0_7] : memref<128x128xbf16, #tpu.memory_space<vmem>>, vector<128x128xbf16>
    %cst_8 = arith.constant dense<0.000000e+00> : vector<8x128xf32>
    %12 = tpu.matmul %10, %11, %cst_8 {dimension_numbers = #tpu.dot_dimension_numbers<[1], [0], [0], [1], [0, 0, 1, 1], [], []>} : vector<8x128xbf16>, vector<128x128xbf16>, vector<8x128xf32> -> vector<8x128xf32>
    %13 = vector.extract_strided_slice %2 {offsets = [1, 0], sizes = [1, 128], strides = [1, 1]} : vector<3x128xf32> to vector<1x128xf32>
    %14 = vector.broadcast %13 : vector<1x128xf32> to vector<8x128xf32>
    %15 = arith.addf %12, %14 : vector<8x128xf32>
    %cst_9 = arith.constant 0.000000e+00 : f32
    %16 = vector.broadcast %cst_9 : f32 to vector<8x128xf32>
    %17 = arith.maximumf %15, %16 : vector<8x128xf32>
    %18 = arith.truncf %17 : vector<8x128xf32> to vector<8x128xbf16>
    %c0_10 = arith.constant 0 : index
    %c0_11 = arith.constant 0 : index
    %19 = vector.load %arg4[%c0_10, %c0_11] : memref<128x128xbf16, #tpu.memory_space<vmem>>, vector<128x128xbf16>
    %cst_12 = arith.constant dense<0.000000e+00> : vector<8x128xf32>
    %20 = tpu.matmul %18, %19, %cst_12 {dimension_numbers = #tpu.dot_dimension_numbers<[1], [0], [0], [1], [0, 0, 1, 1], [], []>} : vector<8x128xbf16>, vector<128x128xbf16>, vector<8x128xf32> -> vector<8x128xf32>
    %21 = vector.extract_strided_slice %2 {offsets = [2, 0], sizes = [1, 128], strides = [1, 1]} : vector<3x128xf32> to vector<1x128xf32>
    %22 = vector.broadcast %21 : vector<1x128xf32> to vector<8x128xf32>
    %23 = arith.addf %20, %22 : vector<8x128xf32>
    %cst_13 = arith.constant 0.000000e+00 : f32
    %24 = vector.broadcast %cst_13 : f32 to vector<8x128xf32>
    %25 = arith.maximumf %23, %24 : vector<8x128xf32>
    %26 = arith.truncf %25 : vector<8x128xf32> to vector<8x128xbf16>
    %c0_14 = arith.constant 0 : index
    %c0_15 = arith.constant 0 : index
    %27 = vector.load %arg5[%c0_14, %c0_15] : memref<128x8xbf16, #tpu.memory_space<vmem>>, vector<128x8xbf16>
    %cst_16 = arith.constant dense<0.000000e+00> : vector<8x8xf32>
    %28 = tpu.matmul %26, %27, %cst_16 {dimension_numbers = #tpu.dot_dimension_numbers<[1], [0], [0], [1], [0, 0, 1, 1], [], []>} : vector<8x128xbf16>, vector<128x8xbf16>, vector<8x8xf32> -> vector<8x8xf32>
    %c0_17 = arith.constant 0 : index
    %c0_18 = arith.constant 0 : index
    %29 = vector.load %arg7[%c0_17, %c0_18] : memref<1x8xf32, #tpu.memory_space<vmem>>, vector<1x8xf32>
    %30 = vector.broadcast %29 : vector<1x8xf32> to vector<8x8xf32>
    %31 = arith.addf %28, %30 : vector<8x8xf32>
    %32 = math.tanh %31 : vector<8x8xf32>
    %c0_19 = arith.constant 0 : index
    %c0_20 = arith.constant 0 : index
    %33 = vector.load %arg8[%c0_19, %c0_20] : memref<8x8xf32, #tpu.memory_space<vmem>>, vector<8x8xf32>
    tpu.vector_store %arg8[%c0_19, %c0_20], %32 {strides = array<i32>} : memref<8x8xf32, #tpu.memory_space<vmem>>, vector<8x8xf32>,
    return
  }
  func.func @transform_0(%arg0: i32) -> (i32, i32) {
    %c0_i32 = arith.constant 0 : i32
    %c0_i32_0 = arith.constant 0 : i32
    return %arg0, %c0_i32 : i32, i32
  }
  func.func @transform_1(%arg0: i32) -> (i32, i32) {
    %c0_i32 = arith.constant 0 : i32
    %c0_i32_0 = arith.constant 0 : i32
    %c0_i32_1 = arith.constant 0 : i32
    return %c0_i32, %c0_i32_0 : i32, i32
  }
  func.func @transform_2(%arg0: i32) -> (i32, i32) {
    %c0_i32 = arith.constant 0 : i32
    %c0_i32_0 = arith.constant 0 : i32
    %c0_i32_1 = arith.constant 0 : i32
    return %c0_i32, %c0_i32_0 : i32, i32
  }
  func.func @transform_3(%arg0: i32) -> (i32, i32) {
    %c0_i32 = arith.constant 0 : i32
    %c0_i32_0 = arith.constant 0 : i32
    %c0_i32_1 = arith.constant 0 : i32
    return %c0_i32, %c0_i32_0 : i32, i32
  }
  func.func @transform_4(%arg0: i32) -> (i32, i32) {
    %c0_i32 = arith.constant 0 : i32
    %c0_i32_0 = arith.constant 0 : i32
    %c0_i32_1 = arith.constant 0 : i32
    return %c0_i32, %c0_i32_0 : i32, i32
  }
  func.func @transform_5(%arg0: i32) -> (i32, i32) {
    %c0_i32 = arith.constant 0 : i32
    %c0_i32_0 = arith.constant 0 : i32
    %c0_i32_1 = arith.constant 0 : i32
    return %c0_i32, %c0_i32_0 : i32, i32
  }
  func.func @transform_6(%arg0: i32) -> (i32, i32) {
    %c0_i32 = arith.constant 0 : i32
    %c0_i32_0 = arith.constant 0 : i32
    %c0_i32_1 = arith.constant 0 : i32
    return %c0_i32, %c0_i32_0 : i32, i32
  }
  func.func @transform_7(%arg0: i32) -> (i32, i32) {
    %c0_i32 = arith.constant 0 : i32
    %c0_i32_0 = arith.constant 0 : i32
    return %arg0, %c0_i32 : i32, i32
  }
}

</mosaic_0001>

<bundles_post_ra>
// kernel: actor_model_forward.1
= control target key start
LH: loop header
LB: loop body
LE: loop exit
PB: predicated region body
PF: predicated region fallthrough
CT: control target
= control target key end

     0   :  { %12 = vsyncpa [#allocation3], 0  ;;  %s882_s0 = inlined_call_operand.vmem [shape: f32[8,32], index: 0, kind: input, shape index: {}]   ;;  %s883_s1 = inlined_call_operand.hbm [shape: bf16[32,128], index: 1, kind: input, shape index: {}]   ;;  %s884_s2 = inlined_call_operand.vmem [shape: bf16[128,128], index: 2, kind: input, shape index: {}]   ;;  %s885_s3 = inlined_call_operand.hbm [shape: bf16[128,128], index: 3, kind: input, shape index: {}]   ;;  %s886_s4 = inlined_call_operand.vmem [shape: bf16[128,8], index: 4, kind: input, shape index: {}]   ;;  %s887_s5 = inlined_call_operand.vmem [shape: f32[3,128], index: 5, kind: input, shape index: {}]   ;;  %s888_s6 = inlined_call_operand.vmem [shape: f32[1,8], index: 6, kind: input, shape index: {}]   ;;  %s889_s7 = inlined_call_operand.hbm [shape: f32[8,8], index: 7, kind: output, shape index: {}]  }
   0x1   :  { %13 = vsyncpa [#allocation6], 0 }
   0x2   :  { %14 = vsyncpa [#allocation4], 0  ;;  %s708_s24 = smov [#allocation2]   ;;  %s636_s28 = scalar_lea.hbm %s883_s1, 256 }
   0x3   :  { %s22_s25 = sshll.u32 %s708_s24, 4  ;;  %p637_p0 = scmp.ne.s32.totalorder %s883_s1, %s636_s28  ;;  %s23_s25 = int_to_ptr.vmem [resolvable:$true] %s22_s25 }
   0x4   :  { %p640_p1 = scmp.lt.u32.totalorder %s636_s28, %s883_s1 }
   0x6   :  { %p642_p2 = pnand %p640_p1, %p637_p0 }
   0x8   :  { %645 = shalt.err (!%p642_p2)
}
   0x9   :  { %s646_s10 = scalar_lea.vmem %s23_s25, 256  ;;  %p651_p4 = scmp.lt.s32.totalorder %s23_s25, %s23_s25 }
   0xa   :  { %p647_p3 = scmp.ne.s32.totalorder %s23_s25, %s646_s10  ;;  %p652_p5 = scmp.lt.s32.totalorder %s646_s10, %s646_s10 }
   0xc   :  { %p653_p6 = por %p652_p5, %p651_p4 }
   0xe   :  { %p654_p7 = pnand %p653_p6, %p647_p3 }
  0x10   :  { %657 = shalt.err (!%p654_p7)
}
  0x11   :  { %s709_s11 = smov 64   ;;  %s710_s12 = smov 4  }
  0x12   :  { %28 = dma.hbm_to_vmem [thread:$0]  %s883_s1, 256, %s23_s25, [#allocation3], %s709_s11, %s709_s11, %s710_s12  }
  0x13   :  { %s711_s15 = smov [#allocation5]   ;;  %s658_s19 = scalar_lea.hbm %s885_s3, 1024 }
  0x14   :  { %s36_s16 = sshll.u32 %s711_s15, 4  ;;  %p659_p8 = scmp.ne.s32.totalorder %s885_s3, %s658_s19  ;;  %s37_s16 = int_to_ptr.vmem [resolvable:$true] %s36_s16 }
  0x15   :  { %p662_p9 = scmp.lt.u32.totalorder %s658_s19, %s885_s3 }
  0x17   :  { %p664_p10 = pnand %p662_p9, %p659_p8 }
  0x19   :  { %667 = shalt.err (!%p664_p10)
}
  0x1a   :  { %s668_s24 = scalar_lea.vmem %s37_s16, 1024  ;;  %p673_p12 = scmp.lt.s32.totalorder %s37_s16, %s37_s16 }
  0x1b   :  { %p669_p11 = scmp.ne.s32.totalorder %s37_s16, %s668_s24  ;;  %p674_p13 = scmp.lt.s32.totalorder %s668_s24, %s668_s24 }
  0x1d   :  { %p675_p0 = por %p674_p13, %p673_p12 }
  0x1f   :  { %p676_p1 = pnand %p675_p0, %p669_p11 }
  0x21   :  { %679 = shalt.err (!%p676_p1)
}
  0x22   :  { %42 = dma.hbm_to_vmem [thread:$0]  %s885_s3, 1024, %s37_s16, [#allocation6], %s709_s11, %s709_s11, %s710_s12  }
  0x23   :  { %702 = dma.done.wait [#allocation3], 256  }
  0x24   :  { %703 = vsyncadd [#allocation3], 4294967040 }
  0x25   :  { %704 = dma.done.wait [#allocation6], 1024  }
  0x26   :  { %705 = vsyncadd [#allocation6], 4294966272  ;;  %v712_v0 = vmov 0.0   ;;  %vm713_vm0 = vmmov 0   ;;  %v608_v1 = vld [vmem:[#allocation2] sm:$0xff]   ;;  %v609_v2 = vld [vmem:[#allocation2 + $0x8] sm:$0xff]   ;;  %v63_v19 = vlaneseq }
  0x27   :  { %533 = vmatprep.subr.bf16.mxu0 %v712_v0  ;;  %537 = vmatprep.mubr.msk.bf16.mxu0 %vm713_vm0, %v712_v0  ;;  %v56_v3 = vld [vmem:[%s882_s0] sm:$0xff]  ;;  %v611_v6 = vld [vmem:[%s884_s2 + $0x8] sm:$0xff]   ;;  %vm79_vm1 = vcmask 261120   ;;  %v612_v7 = vld [vmem:[%s884_s2 + $0x10] sm:$0xff]   ;;  %vm457_vm2 = vcmask 64512  }
  0x28   :  { %541 = vmatprep.subr.bf16.mxu1 %v712_v0  ;;  %557 = vmatprep.mubr.msk.bf16.mxu1 %vm713_vm0, %v712_v0  ;;  %v610_v4 = vld [vmem:[%s884_s2] sm:$0xff]   ;;  %v57_v5 = vpack.c.bf16 %v56_v3, %v56_v3  ;;  %v613_v8 = vld [vmem:[%s884_s2 + $0x18] sm:$0xff]   ;;  %v615_v10 = vld [vmem:[%s884_s2 + $0x28] sm:$0xff]   ;;  %v64_v20 = vshrl.u32 %v63_v19, 7 }
  0x29   :  { %534 = vmatpush3.bf16.msra.mxu0 %v608_v1  ;;  %542 = vmatpush3.bf16.msra.mxu1 %v610_v4  ;;  %v614_v9 = vld [vmem:[%s884_s2 + $0x20] sm:$0xff]   ;;  %v616_v11 = vld [vmem:[%s884_s2 + $0x30] sm:$0xff]   ;;  %v617_v12 = vld [vmem:[%s884_s2 + $0x38] sm:$0xff]  }
  0x2a   :  { %535 = vmatprep.subr.bf16.mxu0 %v712_v0  ;;  %543 = vmatprep.subr.bf16.mxu1 %v712_v0  ;;  %v618_v13 = vld [vmem:[#allocation5] sm:$0xff]   ;;  %v619_v14 = vld [vmem:[#allocation5 + $0x8] sm:$0xff]   ;;  %v620_v15 = vld [vmem:[#allocation5 + $0x10] sm:$0xff]   ;;  %v65_v21 = vsub.s32 0, %v64_v20  ;;  %v143_v39 = vsub.s32 1, %v64_v20  ;;  %v253_v50 = vsub.s32 2, %v64_v20 }
  0x2b   :  { %v621_v16 = vld [vmem:[#allocation5 + $0x18] sm:$0xff]   ;;  %v622_v17 = vld [vmem:[#allocation5 + $0x20] sm:$0xff]   ;;  %v623_v18 = vld [vmem:[#allocation5 + $0x28] sm:$0xff]  }
  0x2c   :  { %v58_v22 = vld [vmem:[%s887_s5] sm:$0x7]  ;;  %v625_v32 = vld [vmem:[#allocation5 + $0x38] sm:$0xff]   ;;  %v628_v35 = vld [vmem:[%s886_s4 + $0x10] sm:$0xff]  }
  0x2d   :  { %536 = vmatpush3.bf16.msra.mxu0 %v609_v2  ;;  %544 = vmatpush3.bf16.msra.mxu1 %v611_v6  ;;  %v66_v23 = vrot.slane %v58_v22, %v65_v21  ;;  %v624_v31 = vld [vmem:[#allocation5 + $0x30] sm:$0xff]   ;;  %v627_v34 = vld [vmem:[%s886_s4 + $0x8] sm:$0xff]   ;;  %v629_v36 = vld [vmem:[%s886_s4 + $0x18] sm:$0xff]   ;;  %v144_v40 = vrot.slane %v58_v22, %v143_v39  ;;  %v254_v51 = vrot.slane %v58_v22, %v253_v50 }
  0x2e   :  { %561 = vmatprep.subr.bf16.mxu0 %v712_v0  ;;  %545 = vmatprep.subr.bf16.mxu1 %v712_v0  ;;  %v626_v33 = vld [vmem:[%s886_s4] sm:$0xff]   ;;  %v631_v38 = vld [vmem:[%s886_s4 + $0x28] sm:$0xff]   ;;  %v632_v48 = vld [vmem:[%s886_s4 + $0x30] sm:$0xff]  }
  0x2f   :  { %v630_v37 = vld [vmem:[%s886_s4 + $0x20] sm:$0xff]   ;;  %v633_v49 = vld [vmem:[%s886_s4 + $0x38] sm:$0xff]   ;;  %s714_s4 = smov [#allocation7]  }
  0x30   :  { %538 = vmatmul.mubr.msk.bf16.vlgmr.msra.gmra.mrb[0].mxu0 %vm79_vm1, %v57_v5  ;;  %v494_v59 = vld [vmem:[%s888_s6] ss:$0 sm:$0xff]  ;;  %s465_s11 = sshll.u32 %s714_s4, 4  ;;  %s466_s11 = int_to_ptr.vmem [resolvable:$true] %s465_s11 }
  0x31   :  { %577 = vmatprep.mubr.msk.bf16.mxu0 %vm713_vm0, %v712_v0  ;;  %546 = vmatpush3.bf16.msra.mxu1 %v612_v7  ;;  %s680_s12 = scalar_lea.vmem %s466_s11, 128  ;;  %p685_p3 = scmp.lt.s32.totalorder %s466_s11, %s466_s11 }
  0x32   :  { %547 = vmatprep.subr.bf16.mxu1 %v712_v0  ;;  %562 = vmatpush3.bf16.msra.mxu0 %v618_v13  ;;  %p681_p2 = scmp.ne.s32.totalorder %s466_s11, %s680_s12  ;;  %p686_p4 = scmp.lt.s32.totalorder %s680_s12, %s680_s12 }
  0x33   :  { %563 = vmatprep.subr.bf16.mxu0 %v712_v0 }
  0x34   :  { %p687_p5 = por %p686_p4, %p685_p3 }
  0x35   :  { %548 = vmatpush3.bf16.msra.mxu1 %v613_v8 }
  0x36   :  { %549 = vmatprep.subr.bf16.mxu1 %v712_v0  ;;  %564 = vmatpush3.bf16.msra.mxu0 %v619_v14  ;;  %p688_p6 = pnand %p687_p5, %p681_p2 }
  0x37   :  { %565 = vmatprep.subr.bf16.mxu0 %v712_v0 }
  0x39   :  { %550 = vmatpush3.bf16.msra.mxu1 %v614_v9 }
  0x3a   :  { %551 = vmatprep.subr.bf16.mxu1 %v712_v0  ;;  %566 = vmatpush3.bf16.msra.mxu0 %v620_v15 }
  0x3b   :  { %567 = vmatprep.subr.bf16.mxu0 %v712_v0 }
  0x3d   :  { %552 = vmatpush3.bf16.msra.mxu1 %v615_v10 }
  0x3e   :  { %553 = vmatprep.subr.bf16.mxu1 %v712_v0  ;;  %568 = vmatpush3.bf16.msra.mxu0 %v621_v16 }
  0x3f   :  { %569 = vmatprep.subr.bf16.mxu0 %v712_v0 }
  0x41   :  { %554 = vmatpush3.bf16.msra.mxu1 %v616_v11 }
  0x42   :  { %555 = vmatprep.subr.bf16.mxu1 %v712_v0  ;;  %570 = vmatpush3.bf16.msra.mxu0 %v622_v17 }
  0x43   :  { %571 = vmatprep.subr.bf16.mxu0 %v712_v0 }
  0x45   :  { %556 = vmatpush3.bf16.msra.mxu1 %v617_v12 }
  0x46   :  { %581 = vmatprep.subr.bf16.mxu1 %v712_v0  ;;  %572 = vmatpush3.bf16.msra.mxu0 %v623_v18 }
  0x47   :  { %573 = vmatprep.subr.bf16.mxu0 %v712_v0 }
  0x4a   :  { %574 = vmatpush3.bf16.msra.mxu0 %v624_v31 }
  0x4b   :  { %575 = vmatprep.subr.bf16.mxu0 %v712_v0 }
  0x4e   :  { %576 = vmatpush3.bf16.msra.mxu0 %v625_v32 }
 0x103   :  { %v117_v24 = vpop.f32.mrb[0].mxu0 }
 0x104   :  { %v118_v25 = vadd.f32 %v117_v24, %v66_v23  ;;  %v539_v26 = vpop.f32.mrb[1].mxu0 }
 0x105   :  { %v120_v27 = vpop.f32.mrb[2].mxu0 }
 0x106   :  { %v123_v28 = vmax.f32 %v118_v25, 0.0  ;;  %v540_v29 = vpop.f32.mrb[3].mxu0 }
 0x108   :  { %v124_v30 = vpack.c.bf16 %v123_v28, %v123_v28 }
 0x10a   :  { %558 = vmatmul.mubr.bf16.vlgmr.msra.gmra.mrb[0].mxu1 %v124_v30 }
 0x10b   :  { %597 = vmatprep.mubr.msk.bf16.mxu1 %vm713_vm0, %v712_v0  ;;  %582 = vmatpush3.bf16.msra.mxu1 %v626_v33 }
 0x10c   :  { %583 = vmatprep.subr.bf16.mxu1 %v712_v0 }
 0x10f   :  { %584 = vmatpush3.bf16.msra.mxu1 %v627_v34 }
 0x110   :  { %585 = vmatprep.subr.bf16.mxu1 %v712_v0 }
 0x113   :  { %586 = vmatpush3.bf16.msra.mxu1 %v628_v35 }
 0x114   :  { %587 = vmatprep.subr.bf16.mxu1 %v712_v0 }
 0x117   :  { %588 = vmatpush3.bf16.msra.mxu1 %v629_v36 }
 0x118   :  { %589 = vmatprep.subr.bf16.mxu1 %v712_v0 }
 0x11b   :  { %590 = vmatpush3.bf16.msra.mxu1 %v630_v37 }
 0x11c   :  { %591 = vmatprep.subr.bf16.mxu1 %v712_v0 }
 0x11f   :  { %592 = vmatpush3.bf16.msra.mxu1 %v631_v38 }
 0x120   :  { %593 = vmatprep.subr.bf16.mxu1 %v712_v0 }
 0x123   :  { %594 = vmatpush3.bf16.msra.mxu1 %v632_v48 }
 0x124   :  { %595 = vmatprep.subr.bf16.mxu1 %v712_v0 }
 0x127   :  { %596 = vmatpush3.bf16.msra.mxu1 %v633_v49 }
 0x1dd   :  { %v227_v41 = vpop.f32.mrb[0].mxu1 }
 0x1de   :  { %v228_v42 = vadd.f32 %v227_v41, %v144_v40  ;;  %v559_v43 = vpop.f32.mrb[1].mxu1 }
 0x1df   :  { %v230_v44 = vpop.f32.mrb[2].mxu1 }
 0x1e0   :  { %v233_v45 = vmax.f32 %v228_v42, 0.0  ;;  %v560_v46 = vpop.f32.mrb[3].mxu1 }
 0x1e2   :  { %v234_v47 = vpack.c.bf16 %v233_v45, %v233_v45 }
 0x1e4   :  { %578 = vmatmul.mubr.bf16.vlgmr.msra.gmra.mrb[4].mxu0 %v234_v47 }
 0x2b7   :  { %v337_v52 = vpop.f32.mrb[4].mxu0 }
 0x2b8   :  { %v338_v53 = vadd.f32 %v337_v52, %v254_v51  ;;  %v579_v54 = vpop.f32.mrb[5].mxu0 }
 0x2b9   :  { %v340_v55 = vpop.f32.mrb[6].mxu0 }
 0x2ba   :  { %v343_v56 = vmax.f32 %v338_v53, 0.0  ;;  %v580_v57 = vpop.f32.mrb[7].mxu0 }
 0x2bc   :  { %v344_v58 = vpack.c.bf16 %v343_v56, %v343_v56 }
 0x2be   :  { %598 = vmatmul.mubr.bf16.vlgmr.msra.gmra.mrb[4].mxu1 %v344_v58 }
 0x391   :  { %v450_v60 = vpop.f32.mrb[4].mxu1 }
 0x392   :  { %v451_v61 = vadd.f32 %v494_v59, %v450_v60  ;;  %v599_v62 = vpop.f32.mrb[5].mxu1 }
 0x393   :  { %v453_v63 = vpop.f32.mrb[6].mxu1 }
 0x394   :  { %634 = vtanh.f32 %v451_v61  ;;  %v600_v0 = vpop.f32.mrb[7].mxu1 }
 0x39e   :  { %v635_v1 = vpop.eup %634 }
 0x39f   :  { %458 = vst.msk [vmem:[#allocation7] sm:$0xff] %vm457_vm2, %v635_v1 }
 0x3a0   :  { %691 = shalt.err (!%p688_p6)
}
 0x3a1   :  { %s692_s14 = scalar_lea.hbm %s889_s7, 128 }
 0x3a2   :  { %p693_p7 = scmp.ne.s32.totalorder %s889_s7, %s692_s14  ;;  %p696_p8 = scmp.lt.u32.totalorder %s692_s14, %s889_s7 }
 0x3a4   :  { %p698_p9 = pnand %p696_p8, %p693_p7 }
 0x3a6   :  { %701 = shalt.err (!%p698_p9)
}
 0x3a7   :  { %468 = dma.vmem_to_hbm [thread:$0]  %s466_s11, 128, %s889_s7, [#allocation4]  }
 0x3a8   :  { %706 = dma.done.wait [#allocation4], 128  }
 0x3a9   :  { %707 = vsyncadd [#allocation4], 4294967168 }
 0x3aa   :  { %472 = vsyncpa [#allocation3], 1 }
 0x3ab   :  { %473 = vsyncpa [#allocation6], 1 }
 0x3ac   :  { %474 = vsyncpa [#allocation4], 1 }

</bundles_post_ra>
